<compile_context>
chip_gen: v5e
topology: v5e:2x2
jax: 0.10.0
libtpu: 0.0.40
codegen_flags: <defaults>
</compile_context>

<pallas_src>
import functools

import numpy as np
import jax
import jax.numpy as jnp
from jax import lax
from jax.experimental import pallas as pl
from jax.experimental.pallas import tpu as pltpu


def _round_up(a, m):
    return (a + m - 1) // m * m


def _conv_block_kernel(x_ref, w_ref, s_ref, o_ref, *, K, cdt):
    """One grid step = B images, fully fused conv + BN + ReLU + 2x2 max-pool.

    x_ref: (B*Hp_r, Wp*Cin)     padded images; rows=(b, padded_h), lanes=(padded_w, cin)
    w_ref: (K, Wp*Cin, 2*out_w) conv weights with BN scale, the dw taps and the
                                W-pool column selection folded in; the two out_w
                                halves are the (w=2j) / (w=2j+1) pooling columns
    s_ref: (1, out_w)           fused shift = (conv_b - mean)*scale + beta, tiled per wh
    o_ref: (B*Hp_r, out_w)      pooled rows live at even row indices; lanes=(wh, cout)
    """
    x = x_ref[...]
    MB, WpCin = x.shape
    out2 = w_ref.shape[-1]
    half = out2 // 2

    # Vertical (dh) taps are plain sublane shifts of the row-stacked images. Pad
    # with K-1 zero rows so every tap keeps the common length MB (shifted-in rows
    # only ever contribute to garbage output rows that the wrapper discards).
    xp = jnp.concatenate([x, jnp.zeros((K - 1, WpCin), x.dtype)], axis=0)

    acc = None
    for dh in range(K):                                      # static unroll (K = 3)
        tap = xp[dh:dh + MB, :].astype(cdt)                  # (MB, Wp*Cin)
        d = jnp.dot(tap, w_ref[dh], preferred_element_type=jnp.float32)
        acc = d if acc is None else acc + d                  # (MB, 2*out_w) f32

    # Max-pool over W: the two 128-aligned lane halves are the (w=2j)/(w=2j+1) columns.
    m = jnp.maximum(acc[:, :half], acc[:, half:])            # (MB, out_w)
    # Max-pool over H: pair each row with the next; valid results land on even rows.
    m_dn = jnp.concatenate([m[1:, :], jnp.zeros((1, half), m.dtype)], axis=0)
    m = jnp.maximum(m, m_dn)
    # Bias/BN shift (commutes with max), ReLU once after pooling (monotone), store.
    o_ref[...] = jnp.maximum(m + s_ref[...], 0.0).astype(o_ref.dtype)


@functools.partial(jax.jit, static_argnames=("compute_dtype", "images_per_step"))
def conv_block_forward(x_nchw, w, b, gamma, beta, r_mean, r_var, *,
                       compute_dtype=jnp.float32, images_per_step=None):
    """ConvBlock(layout='cnap', kernel_size=3, strides=1, padding='same',
    pool_size=2, pool_strides=2, activation='relu') forward pass (NCHW I/O)."""
    eps = 1e-5
    N, Cin, H, W = x_nchw.shape
    Cout, Cin2, K, K2 = w.shape
    assert Cin2 == Cin and K == K2
    assert K % 2 == 1, "'same' padding with pad=K//2 is only valid for odd kernel sizes"
    assert H % 2 == 0 and W % 2 == 0, "2x2/stride-2 max-pool path needs even H, W"
    pad = K // 2
    Hp, Wp = H + 2 * pad, W + 2 * pad
    Hh, Wh = H // 2, W // 2
    Hp_r = _round_up(Hp, 8)                  # sublane-aligned padded rows per image
    out_w = _round_up(Wh * Cout, 128)        # lane-dense pooled output width

    # ---- images per grid step: amortize the ~0.35us/step overhead, but keep
    #      >= 2 grid steps when possible so both v7x TensorCores get work ----
    if images_per_step is None:
        B = min(8, max(1, -(-N // 2)))
    else:
        B = max(1, min(int(images_per_step), N))
    G = -(-N // B)
    B = -(-N // G)
    N_pad = G * B

    # ---- input: NCHW -> zero-padded NHWC, repacked lane-dense as (rows, Wp*Cin).
    #      Kept f32 so the in-kernel row shifts stay trivially cheap; the bf16
    #      path only narrows the (much larger) folded weight operand. ----
    x = jnp.transpose(x_nchw, (0, 2, 3, 1)).astype(jnp.float32)
    x = jnp.pad(x, ((0, N_pad - N), (pad, Hp_r - H - pad), (pad, pad), (0, 0)))
    x2 = x.reshape(N_pad * Hp_r, Wp * Cin)

    # ---- weights: fold BN scale, the horizontal (dw) taps and the W-pool column
    #      selection into one (K, Wp*Cin, 2*out_w) matrix so the kernel needs no
    #      lane-granular relayouts at all (MXU does the gather for free) ----
    scale = gamma / jnp.sqrt(r_var + eps)                        # (Cout,)
    wf = jnp.transpose(w, (2, 3, 1, 0)) * scale                  # (K, K, Cin, Cout)
    sel = np.zeros((K, Wp, 2, Wh), dtype=np.float32)             # (dw, j, jsel, wh)
    for dw in range(K):
        for jsel in range(2):
            for wh in range(Wh):
                sel[dw, 2 * wh + jsel + dw, jsel, wh] = 1.0
    wsel = jnp.einsum("adio,djsh->ajisho", wf, jnp.asarray(sel))  # (K,Wp,Cin,2,Wh,Cout)
    wsel = wsel.reshape(K, Wp * Cin, 2, Wh * Cout)
    wsel = jnp.pad(wsel, ((0, 0), (0, 0), (0, 0), (0, out_w - Wh * Cout)))
    wsel = wsel.reshape(K, Wp * Cin, 2 * out_w).astype(compute_dtype)

    shift = (b - r_mean) * scale + beta                          # (Cout,)
    shift2 = jnp.pad(jnp.tile(shift, Wh), (0, out_w - Wh * Cout))
    shift2 = shift2.reshape(1, out_w).astype(jnp.float32)

    kernel = functools.partial(_conv_block_kernel, K=K, cdt=compute_dtype)

    out = pl.pallas_call(
        kernel,
        out_shape=jax.ShapeDtypeStruct((N_pad * Hp_r, out_w), jnp.float32),
        grid_spec=pltpu.PrefetchScalarGridSpec(
            num_scalar_prefetch=0,
            grid=(G,),
            in_specs=[
                pl.BlockSpec((B * Hp_r, Wp * Cin), lambda g: (g, 0)),
                pl.BlockSpec((K, Wp * Cin, 2 * out_w), lambda g: (0, 0, 0)),
                pl.BlockSpec((1, out_w), lambda g: (0, 0)),
            ],
            out_specs=pl.BlockSpec((B * Hp_r, out_w), lambda g: (g, 0)),
        ),
        compiler_params=pltpu.CompilerParams(
            dimension_semantics=("parallel",),
            vmem_limit_bytes=32 * 1024 * 1024,
        ),
        cost_estimate=pl.CostEstimate(
            flops=2 * N * H * W * K * K * Cin * Cout,
            transcendentals=0,
            bytes_accessed=(int(x2.size) * 4
                            + int(wsel.size) * int(wsel.dtype.itemsize)
                            + int(N_pad * Hp_r * out_w) * 4),
        ),
    )(x2, wsel, shift2)

    # ---- unpack: even rows = pooled rows, first Wh*Cout lanes = real channels ----
    out = out.reshape(N_pad, Hp_r, out_w)[:N, 0:2 * Hh:2, :Wh * Cout]
    out = out.reshape(N, Hh, Wh, Cout)
    return jnp.transpose(out, (0, 3, 1, 2))                      # (N, Cout, Hh, Wh)


def _reference(x_nchw, w, b, gamma, beta, r_mean, r_var):
    """Pure-JAX reference matching PyTorch conv+bn(eval)+relu+maxpool."""
    eps = 1e-5
    z = lax.conv_general_dilated(
        x_nchw, w, window_strides=(1, 1), padding="SAME",
        dimension_numbers=("NCHW", "OIHW", "NCHW"))
    z = z + b[None, :, None, None]
    z = (z - r_mean[None, :, None, None]) / jnp.sqrt(r_var + eps)[None, :, None, None]
    z = z * gamma[None, :, None, None] + beta[None, :, None, None]
    z = jnp.maximum(z, 0.0)
    return lax.reduce_window(z, -jnp.inf, lax.max,
                             (1, 1, 2, 2), (1, 1, 2, 2), "VALID")


if __name__ == "__main__":
    key = jax.random.PRNGKey(0)
    k_x, k_w, k_b, k_g, k_be, k_m, k_v = jax.random.split(key, 7)

    N, Cin, H, W = 2, 4, 16, 16
    Cout, K = 8, 3

    x = jax.random.normal(k_x, (N, Cin, H, W), dtype=jnp.float32)
    w = jax.random.normal(k_w, (Cout, Cin, K, K), dtype=jnp.float32) * 0.1
    b = jax.random.normal(k_b, (Cout,), dtype=jnp.float32) * 0.1
    gamma = 1.0 + 0.1 * jax.random.normal(k_g, (Cout,), dtype=jnp.float32)
    beta = 0.1 * jax.random.normal(k_be, (Cout,), dtype=jnp.float32)
    r_mean = 0.1 * jax.random.normal(k_m, (Cout,), dtype=jnp.float32)
    r_var = jax.random.uniform(k_v, (Cout,), minval=0.5, maxval=1.5, dtype=jnp.float32)

    y_ref = jax.block_until_ready(_reference(x, w, b, gamma, beta, r_mean, r_var))

    # f32 compute path (bit-tight check)
    y = jax.block_until_ready(conv_block_forward(x, w, b, gamma, beta, r_mean, r_var))
    assert y.shape == (N, Cout, H // 2, W // 2), y.shape
    err = float(jnp.max(jnp.abs(y - y_ref)))
    assert err < 1e-4, err

    # bf16 matmul path (halves weight HBM bytes / doubles MXU rate on v6e/v7x)
    y16 = jax.block_until_ready(
        conv_block_forward(x, w, b, gamma, beta, r_mean, r_var,
                           compute_dtype=jnp.bfloat16))
    err16 = float(jnp.max(jnp.abs(y16 - y_ref)))
    assert err16 < 6e-2, err16

    print("KERNEL_OK")
</pallas_src>

<mosaic_0001>
module attributes {stable_mosaic.version = 11 : i64} {
  func.func @_conv_block_kernel(%arg0: i32, %arg1: memref<24x72xf32, #tpu.memory_space<vmem>>, %arg2: memref<3x72x256xf32, #tpu.memory_space<vmem>>, %arg3: memref<1x128xf32, #tpu.memory_space<vmem>>, %arg4: memref<24x128xf32, #tpu.memory_space<vmem>>) attributes {dimension_semantics = [#tpu.dimension_semantics<parallel>], iteration_bounds = array<i64: 2>, scalar_prefetch = 0 : i64, scratch_operands = 0 : i64, tpu.core_type = #tpu.core_type<tc>, window_params = [{transform_indices = @transform_0, window_bounds = array<i64: 24, 72>}, {pipeline_mode = #tpu.pipeline_mode<synchronous>, transform_indices = @transform_1, window_bounds = array<i64: 3, 72, 256>}, {pipeline_mode = #tpu.pipeline_mode<synchronous>, transform_indices = @transform_2, window_bounds = array<i64: 1, 128>}, {transform_indices = @transform_3, window_bounds = array<i64: 24, 128>}]} {
    %c0 = arith.constant 0 : index
    %c0_0 = arith.constant 0 : index
    %0 = vector.load %arg1[%c0, %c0_0] : memref<24x72xf32, #tpu.memory_space<vmem>>, vector<24x72xf32>
    %cst = arith.constant 0.000000e+00 : f32
    %1 = vector.broadcast %cst : f32 to vector<2x72xf32>
    %2 = tpu.concatenate %0, %1 in 0 : vector<24x72xf32>, vector<2x72xf32> -> vector<26x72xf32>
    %3 = vector.extract_strided_slice %2 {offsets = [0, 0], sizes = [24, 72], strides = [1, 1]} : vector<26x72xf32> to vector<24x72xf32>
    %c0_1 = arith.constant 0 : index
    %c0_2 = arith.constant 0 : index
    %c0_3 = arith.constant 0 : index
    %4 = vector.load %arg2[%c0_1, %c0_2, %c0_3] : memref<3x72x256xf32, #tpu.memory_space<vmem>>, vector<1x72x256xf32>
    %5 = vector.shape_cast %4 : vector<1x72x256xf32> to vector<72x256xf32>
    %cst_4 = arith.constant dense<0.000000e+00> : vector<24x256xf32>
    %6 = tpu.matmul %3, %5, %cst_4 {dimension_numbers = #tpu.dot_dimension_numbers<[1], [0], [0], [1], [0, 0, 1, 1], [], []>} : vector<24x72xf32>, vector<72x256xf32>, vector<24x256xf32> -> vector<24x256xf32>
    %7 = vector.extract_strided_slice %2 {offsets = [1, 0], sizes = [24, 72], strides = [1, 1]} : vector<26x72xf32> to vector<24x72xf32>
    %c1 = arith.constant 1 : index
    %c0_5 = arith.constant 0 : index
    %c0_6 = arith.constant 0 : index
    %8 = vector.load %arg2[%c1, %c0_5, %c0_6] : memref<3x72x256xf32, #tpu.memory_space<vmem>>, vector<1x72x256xf32>
    %9 = vector.shape_cast %8 : vector<1x72x256xf32> to vector<72x256xf32>
    %cst_7 = arith.constant dense<0.000000e+00> : vector<24x256xf32>
    %10 = tpu.matmul %7, %9, %cst_7 {dimension_numbers = #tpu.dot_dimension_numbers<[1], [0], [0], [1], [0, 0, 1, 1], [], []>} : vector<24x72xf32>, vector<72x256xf32>, vector<24x256xf32> -> vector<24x256xf32>
    %11 = arith.addf %6, %10 : vector<24x256xf32>
    %12 = vector.extract_strided_slice %2 {offsets = [2, 0], sizes = [24, 72], strides = [1, 1]} : vector<26x72xf32> to vector<24x72xf32>
    %c2 = arith.constant 2 : index
    %c0_8 = arith.constant 0 : index
    %c0_9 = arith.constant 0 : index
    %13 = vector.load %arg2[%c2, %c0_8, %c0_9] : memref<3x72x256xf32, #tpu.memory_space<vmem>>, vector<1x72x256xf32>
    %14 = vector.shape_cast %13 : vector<1x72x256xf32> to vector<72x256xf32>
    %cst_10 = arith.constant dense<0.000000e+00> : vector<24x256xf32>
    %15 = tpu.matmul %12, %14, %cst_10 {dimension_numbers = #tpu.dot_dimension_numbers<[1], [0], [0], [1], [0, 0, 1, 1], [], []>} : vector<24x72xf32>, vector<72x256xf32>, vector<24x256xf32> -> vector<24x256xf32>
    %16 = arith.addf %11, %15 : vector<24x256xf32>
    %17 = vector.extract_strided_slice %16 {offsets = [0, 0], sizes = [24, 128], strides = [1, 1]} : vector<24x256xf32> to vector<24x128xf32>
    %18 = vector.extract_strided_slice %16 {offsets = [0, 128], sizes = [24, 128], strides = [1, 1]} : vector<24x256xf32> to vector<24x128xf32>
    %19 = arith.maximumf %17, %18 : vector<24x128xf32>
    %20 = vector.extract_strided_slice %19 {offsets = [1, 0], sizes = [23, 128], strides = [1, 1]} : vector<24x128xf32> to vector<23x128xf32>
    %cst_11 = arith.constant 0.000000e+00 : f32
    %21 = vector.broadcast %cst_11 : f32 to vector<1x128xf32>
    %22 = tpu.concatenate %20, %21 in 0 : vector<23x128xf32>, vector<1x128xf32> -> vector<24x128xf32>
    %23 = arith.maximumf %19, %22 : vector<24x128xf32>
    %c0_12 = arith.constant 0 : index
    %c0_13 = arith.constant 0 : index
    %24 = vector.load %arg3[%c0_12, %c0_13] : memref<1x128xf32, #tpu.memory_space<vmem>>, vector<1x128xf32>
    %25 = vector.broadcast %24 : vector<1x128xf32> to vector<24x128xf32>
    %26 = arith.addf %23, %25 : vector<24x128xf32>
    %cst_14 = arith.constant 0.000000e+00 : f32
    %27 = vector.broadcast %cst_14 : f32 to vector<24x128xf32>
    %28 = arith.maximumf %26, %27 : vector<24x128xf32>
    %c0_15 = arith.constant 0 : index
    %c0_16 = arith.constant 0 : index
    %29 = vector.load %arg4[%c0_15, %c0_16] : memref<24x128xf32, #tpu.memory_space<vmem>>, vector<24x128xf32>
    tpu.vector_store %arg4[%c0_15, %c0_16], %28 {strides = array<i32>} : memref<24x128xf32, #tpu.memory_space<vmem>>, vector<24x128xf32>,
    return
  }
  func.func @transform_0(%arg0: i32) -> (i32, i32) {
    %c0_i32 = arith.constant 0 : i32
    %c0_i32_0 = arith.constant 0 : i32
    return %arg0, %c0_i32 : i32, i32
  }
  func.func @transform_1(%arg0: i32) -> (i32, i32, i32) {
    %c0_i32 = arith.constant 0 : i32
    %c0_i32_0 = arith.constant 0 : i32
    %c0_i32_1 = arith.constant 0 : i32
    %c0_i32_2 = arith.constant 0 : i32
    return %c0_i32, %c0_i32_0, %c0_i32_1 : i32, i32, i32
  }
  func.func @transform_2(%arg0: i32) -> (i32, i32) {
    %c0_i32 = arith.constant 0 : i32
    %c0_i32_0 = arith.constant 0 : i32
    %c0_i32_1 = arith.constant 0 : i32
    return %c0_i32, %c0_i32_0 : i32, i32
  }
  func.func @transform_3(%arg0: i32) -> (i32, i32) {
    %c0_i32 = arith.constant 0 : i32
    %c0_i32_0 = arith.constant 0 : i32
    return %arg0, %c0_i32 : i32, i32
  }
}

</mosaic_0001>

<bundles_post_ra>
// kernel: tile.8
= control target key start
LH: loop header
LB: loop body
LE: loop exit
PB: predicated region body
PF: predicated region fallthrough
CT: control target
= control target key end

     0   :  { %s22_s0 = inlined_call_operand.vmem [shape: f32[8], index: 0, kind: input, shape index: {}]   ;;  %s23_s1 = inlined_call_operand.vmem [shape: f32[8,8], index: 1, kind: output, shape index: {}]  }
   0x1   :  { %v4_v0 = vld [vmem:[%s22_s0] ss:$0 sm:$0xff] }
   0x2   :  { %5 = vst [vmem:[%s23_s1] sm:$0xff] %v4_v0 }

// kernel: tile.9
= control target key start
LH: loop header
LB: loop body
LE: loop exit
PB: predicated region body
PF: predicated region fallthrough
CT: control target
= control target key end

     0   :  { %s67_s10 = smov 56   ;;  %s68_s11 = smov 40   ;;  %vm3_vm0 = vcmask 64512   ;;  %vm9_vm1 = vcmask 523712   ;;  %vm15_vm2 = vcmask 458112   ;;  %vm21_vm3 = vcmask 392512   ;;  %s111_s0 = inlined_call_operand.vmem [shape: f32[8,8], index: 0, kind: input, shape index: {}]   ;;  %s112_s1 = inlined_call_operand.vmem [shape: f32[64], index: 1, kind: output, shape index: {}]  }
   0x1   :  { %v53_v0 = vld [vmem:[%s111_s0 + $0x7] sm:$0x1]   ;;  %v55_v1 = vld [vmem:[%s111_s0 + $0x5] sm:$0x1]   ;;  %v57_v2 = vld [vmem:[%s111_s0 + $0x3] sm:$0x1]  }
   0x2   :  { %7 = vrot.lane.b32.xlu0 %v53_v0, %s67_s10  ;;  %19 = vrot.lane.b32.xlu1 %v55_v1, %s68_s11  ;;  %s69_s14 = smov 24   ;;  %v54_v3 = vld [vmem:[%s111_s0 + $0x6] sm:$0x1]   ;;  %v56_v4 = vld [vmem:[%s111_s0 + $0x4] sm:$0x1]   ;;  %s70_s21 = smov 48  }
   0x3   :  { %31 = vrot.lane.b32.xlu2 %v57_v2, %s69_s14  ;;  %v58_v5 = vld [vmem:[%s111_s0 + $0x2] sm:$0x1]   ;;  %s71_s22 = smov 32   ;;  %s72_s23 = smov 16   ;;  %v59_v6 = vld [vmem:[%s111_s0 + $0x1] sm:$0x1]  }
   0x4   :  { %s73_s26 = smov 8   ;;  %v2_v7 = vld [vmem:[%s111_s0] sm:$0x1]   ;;  %vm27_vm4 = vcmask 326912   ;;  %vm33_vm5 = vcmask 261312   ;;  %vm39_vm6 = vcmask 195712  }
   0x5   :  { %4 = vst.msk [vmem:[#allocation0] sm:$0x1] %vm3_vm0, %v2_v7   ;;  %vm45_vm7 = vcmask 130112  }
   0xa   :  { %13 = vrot.lane.b32.xlu0 %v54_v3, %s70_s21  ;;  %25 = vrot.lane.b32.xlu1 %v56_v4, %s71_s22 }
   0xb   :  { %37 = vrot.lane.b32.xlu2 %v58_v5, %s72_s23 }
  0x12   :  { %43 = vrot.lane.b32.xlu0 %v59_v6, %s73_s26 }
  0x5d   :  { %v32_v8 = vpop.permute.xlu2 %31  }
  0x65   :  { %v38_v9 = vpop.permute.xlu2 %37  }
  0x74   :  { %v8_v10 = vpop.permute.xlu0 %7   ;;  %v20_v11 = vpop.permute.xlu1 %19  }
  0x75   :  { %10 = vst.msk [vmem:[#allocation0] sm:$0x1] %vm9_vm1, %v8_v10  }
  0x7c   :  { %v14_v12 = vpop.permute.xlu0 %13   ;;  %v26_v13 = vpop.permute.xlu1 %25  }
  0x7d   :  { %16 = vst.msk [vmem:[#allocation0] sm:$0x1] %vm15_vm2, %v14_v12  }
  0x7e   :  { %22 = vst.msk [vmem:[#allocation0] sm:$0x1] %vm21_vm3, %v20_v11  }
  0x7f   :  { %28 = vst.msk [vmem:[#allocation0] sm:$0x1] %vm27_vm4, %v26_v13  }
  0x80   :  { %34 = vst.msk [vmem:[#allocation0] sm:$0x1] %vm33_vm5, %v32_v8  }
  0x81   :  { %40 = vst.msk [vmem:[#allocation0] sm:$0x1] %vm39_vm6, %v38_v9  }
  0x84   :  { %v44_v14 = vpop.permute.xlu0 %43  }
  0x85   :  { %46 = vst.msk [vmem:[#allocation0] sm:$0x1] %vm45_vm7, %v44_v14  }
  0x8c   :  { %v49_v15 = vld [vmem:[#allocation0] sm:$0x1] }
  0x8d   :  { %52 = vst [vmem:[%s112_s1] sm:$0x1] %v49_v15 }

// kernel: conv_block_forward.1
= control target key start
LH: loop header
LB: loop body
LE: loop exit
PB: predicated region body
PF: predicated region fallthrough
CT: control target
= control target key end

     0   :  { %s641_s12 = smov 0   ;;  %s880_s0 = inlined_call_operand.vmem [shape: f32[48,72], index: 0, kind: input, shape index: {}]   ;;  %s881_s1 = inlined_call_operand.vmem [shape: f32[3,72,256], index: 1, kind: input, shape index: {}]   ;;  %s882_s2 = inlined_call_operand.vmem [shape: f32[1,128], index: 2, kind: input, shape index: {}]   ;;  %s883_s3 = inlined_call_operand.vmem [shape: f32[48,128], index: 3, kind: output, shape index: {}]  }
   0x1 LB: > { %s521_s13 = sadd.s32 4294967295, %s618_s12   ;;  %p525_p0 = scmp.ge.s32.totalorder %s618_s12, 1  ;;  %s618_s12 = sphi %s641_s12, %s13_s12  }
   0x2   : > { %p138_p1 = scmp.lt.s32.totalorder %s618_s12, 3 }
   0x4   : > { %p139_p2 = pnand %p525_p0, %p138_p1 }
   0x5   : > { %s162_s20 = smul.u32 (!%p139_p2), 3, %s521_s13 }
   0x6   : > { %142 = sbr.rel (%p139_p2) target bundleno = 210 (0xd2), region = 32 }
   0x7   : > { %p163_p3 = scmp.lt.s32.totalorder (!%p139_p2), %s162_s20, 5 }
   0xb   : > { %v544_v0 = vld [vmem:[%s881_s1 + $0x110] sm:$0xff]  ;;  %v545_v1 = vld [vmem:[%s881_s1 + $0x118] sm:$0xff]  ;;  %v193_v2 = vld [vmem:[%s881_s1 + $0x80] sm:$0xff]  ;;  %s885_s20 = smov (!%p163_p3, %s162_s20), 5  ;;  %vm218_vm0 = vcmask 1046528   ;;  %vm226_vm1 = vcmask 588800  }
   0xc   : > { %240 = vmatpush.msra.mxu0 %v544_v0  ;;  %266 = vmatpush.msra.mxu1 %v545_v1  ;;  %v194_v3 = vld [vmem:[%s881_s1 + $0x88] sm:$0xff]  ;;  %v542_v4 = vld [vmem:[%s881_s1 + $0x100] sm:$0xff]  ;;  %v191_v6 = vld [vmem:[%s881_s1 + $0x70] sm:$0xff]  ;;  %s526_s26 = sshll.u32 %s885_s20, 3  ;;  %v620_v54 = vmov 0.0   ;;  %vm362_vm2 = vcmask 1045504  }
   0xd   : > { %v543_v5 = vld [vmem:[%s881_s1 + $0x108] sm:$0xff]  ;;  %298 = vmatpush.msra.mxu2 %v193_v2  ;;  %324 = vmatpush.msra.mxu3 %v194_v3  ;;  %v192_v7 = vld [vmem:[%s881_s1 + $0x78] sm:$0xff]  ;;  %v540_v8 = vld [vmem:[%s881_s1 + $0xf0] sm:$0xff]  ;;  %s729_s15 = scalar_lea.vmem %s880_s0, %s526_s26  ;;  %v224_v55 = vrot.slane %v620_v54, 1  ;;  %s172_s7 = scalar_lea.vmem %s883_s3, %s526_s26 }
   0xe   : > { %241 = vmatpush.msra.mxu0 %v542_v4  ;;  %267 = vmatpush.msra.mxu1 %v543_v5  ;;  %v541_v9 = vld [vmem:[%s881_s1 + $0xf8] sm:$0xff]  ;;  %v189_v10 = vld [vmem:[%s881_s1 + $0x60] sm:$0xff]  ;;  %v190_v11 = vld [vmem:[%s881_s1 + $0x68] sm:$0xff] }
   0xf   : > { %299 = vmatpush.msra.mxu2 %v191_v6  ;;  %325 = vmatpush.msra.mxu3 %v192_v7  ;;  %v538_v12 = vld [vmem:[%s881_s1 + $0xe0] sm:$0xff]  ;;  %v539_v13 = vld [vmem:[%s881_s1 + $0xe8] sm:$0xff]  ;;  %v187_v14 = vld [vmem:[%s881_s1 + $0x50] sm:$0xff]  ;;  %v368_v6 = vrot.slane %v620_v54, 2 }
  0x10   : > { %242 = vmatpush.msra.mxu0 %v540_v8  ;;  %268 = vmatpush.msra.mxu1 %v541_v9  ;;  %v188_v15 = vld [vmem:[%s881_s1 + $0x58] sm:$0xff]  ;;  %v536_v16 = vld [vmem:[%s881_s1 + $0xd0] sm:$0xff]  ;;  %v185_v18 = vld [vmem:[%s881_s1 + $0x40] sm:$0xff] }
  0x11   : > { %300 = vmatpush.msra.mxu2 %v189_v10  ;;  %326 = vmatpush.msra.mxu3 %v190_v11  ;;  %v537_v17 = vld [vmem:[%s881_s1 + $0xd8] sm:$0xff]  ;;  %v186_v19 = vld [vmem:[%s881_s1 + $0x48] sm:$0xff]  ;;  %v534_v20 = vld [vmem:[%s881_s1 + $0xc0] sm:$0xff] }
  0x12   : > { %243 = vmatpush.msra.mxu0 %v538_v12  ;;  %269 = vmatpush.msra.mxu1 %v539_v13  ;;  %v535_v21 = vld [vmem:[%s881_s1 + $0xc8] sm:$0xff]  ;;  %v183_v22 = vld [vmem:[%s881_s1 + $0x30] sm:$0xff]  ;;  %v184_v23 = vld [vmem:[%s881_s1 + $0x38] sm:$0xff] }
  0x13   : > { %301 = vmatpush.msra.mxu2 %v187_v14  ;;  %327 = vmatpush.msra.mxu3 %v188_v15  ;;  %v532_v24 = vld [vmem:[%s881_s1 + $0xb0] sm:$0xff]  ;;  %v533_v25 = vld [vmem:[%s881_s1 + $0xb8] sm:$0xff]  ;;  %v181_v26 = vld [vmem:[%s881_s1 + $0x20] sm:$0xff] }
  0x14   : > { %244 = vmatpush.msra.mxu0 %v536_v16  ;;  %270 = vmatpush.msra.mxu1 %v537_v17  ;;  %v182_v27 = vld [vmem:[%s881_s1 + $0x28] sm:$0xff]  ;;  %v530_v28 = vld [vmem:[%s881_s1 + $0xa0] sm:$0xff]  ;;  %v179_v32 = vld [vmem:[%s881_s1 + $0x10] sm:$0xff] }
  0x15   : > { %302 = vmatpush.msra.mxu2 %v185_v18  ;;  %328 = vmatpush.msra.mxu3 %v186_v19  ;;  %v531_v29 = vld [vmem:[%s881_s1 + $0xa8] sm:$0xff]  ;;  %v750_v30 = vld [vmem:[%s729_s15] sm:$0xff]  ;;  %v180_v33 = vld [vmem:[%s881_s1 + $0x18] sm:$0xff] }
  0x16   : > { %245 = vmatpush.msra.mxu0 %v534_v20  ;;  %271 = vmatpush.msra.mxu1 %v535_v21  ;;  %v753_v31 = vld [vmem:[%s729_s15 + $0x8] sm:$0xff]  ;;  %v219_v34 = vrot.slane %v750_v30, 1  ;;  %v528_v36 = vld [vmem:[%s881_s1 + $0x90] sm:$0xff]  ;;  %v529_v37 = vld [vmem:[%s881_s1 + $0x98] sm:$0xff]  ;;  %v363_v63 = vrot.slane %v750_v30, 2 }
  0x17   : > { %303 = vmatpush.msra.mxu2 %v183_v22  ;;  %329 = vmatpush.msra.mxu3 %v184_v23  ;;  %v220_v35 = vrot.slane %v753_v31, 1  ;;  %v177_v38 = vld [vmem:[%s881_s1] sm:$0xff]  ;;  %v178_v39 = vld [vmem:[%s881_s1 + $0x8] sm:$0xff]  ;;  %v777_v41 = vld [vmem:[%s729_s15 + $0x10] sm:$0xff]  ;;  %v364_v0 = vrot.slane %v753_v31, 2 }
  0x18   : > { %246 = vmatpush.msra.mxu0 %v532_v24  ;;  %272 = vmatpush.msra.mxu1 %v533_v25  ;;  %v574_v42 = vld [vmem:[%s881_s1 + $0x1a0] sm:$0xff]  ;;  %v575_v43 = vld [vmem:[%s881_s1 + $0x1a8] sm:$0xff]  ;;  %v572_v44 = vld [vmem:[%s881_s1 + $0x190] sm:$0xff]  ;;  %v222_v46 = vrot.slane %v777_v41, 1  ;;  %v366_v1 = vrot.slane %v777_v41, 2 }
  0x19   : > { %304 = vmatpush.msra.mxu2 %v181_v26  ;;  %330 = vmatpush.msra.mxu3 %v182_v27  ;;  %v221_v40 = vsel %vm218_vm0, %v219_v34, %v220_v35  ;;  %v573_v45 = vld [vmem:[%s881_s1 + $0x198] sm:$0xff]  ;;  %v570_v47 = vld [vmem:[%s881_s1 + $0x180] sm:$0xff]  ;;  %v571_v48 = vld [vmem:[%s881_s1 + $0x188] sm:$0xff]  ;;  %v365_v4 = vsel %vm362_vm2, %v363_v63, %v364_v0 }
  0x1a   : > { %247 = vmatpush.msra.mxu0 %v530_v28  ;;  %273 = vmatpush.msra.mxu1 %v531_v29  ;;  %v223_v49 = vsel %vm218_vm0, %v220_v35, %v222_v46  ;;  %v568_v50 = vld [vmem:[%s881_s1 + $0x170] sm:$0xff]  ;;  %v569_v51 = vld [vmem:[%s881_s1 + $0x178] sm:$0xff]  ;;  %v566_v52 = vld [vmem:[%s881_s1 + $0x160] sm:$0xff]  ;;  %v225_v58 = vsel %vm218_vm0, %v222_v46, %v224_v55  ;;  %v367_v5 = vsel %vm362_vm2, %v364_v0, %v366_v1 }
  0x1b   : > { %305 = vmatpush.msra.mxu2 %v179_v32  ;;  %331 = vmatpush.msra.mxu3 %v180_v33  ;;  %v567_v53 = vld [vmem:[%s881_s1 + $0x168] sm:$0xff]  ;;  %v564_v56 = vld [vmem:[%s881_s1 + $0x150] sm:$0xff]  ;;  %v565_v57 = vld [vmem:[%s881_s1 + $0x158] sm:$0xff]  ;;  %v369_v7 = vsel %vm362_vm2, %v366_v1, %v368_v6 }
  0x1c   : > { %248 = vmatpush.msra.mxu0 %v528_v36  ;;  %274 = vmatpush.msra.mxu1 %v529_v37  ;;  %v562_v59 = vld [vmem:[%s881_s1 + $0x140] sm:$0xff]  ;;  %v563_v60 = vld [vmem:[%s881_s1 + $0x148] sm:$0xff]  ;;  %v560_v61 = vld [vmem:[%s881_s1 + $0x130] sm:$0xff] }
  0x1d   : > { %306 = vmatpush.msra.mxu2 %v177_v38  ;;  %332 = vmatpush.msra.mxu3 %v178_v39  ;;  %v561_v62 = vld [vmem:[%s881_s1 + $0x138] sm:$0xff]  ;;  %v558_v2 = vld [vmem:[%s881_s1 + $0x120] sm:$0xff]  ;;  %v559_v3 = vld [vmem:[%s881_s1 + $0x128] sm:$0xff] }
  0x1e   : > { %546 = vmatmul.msk.f32.vlgmr.msra.gmra.mxu0 %vm226_vm1, %v221_v40  ;;  %549 = vmatmul.msk.f32.vlgmr.msra.gmra.mxu1 %vm226_vm1, %v221_v40  ;;  %v611_v36 = vld [vmem:[%s882_s2] ss:$0 sm:$0xff] }
  0x1f   : > { %552 = vmatmul.msk.f32.vlgmr.msra.gmra.mxu2 %vm226_vm1, %v750_v30  ;;  %555 = vmatmul.msk.f32.vlgmr.msra.gmra.mxu3 %vm226_vm1, %v750_v30 }
  0x20   : > { %584 = vmatpush.msrb.mxu2 %v574_v42  ;;  %593 = vmatpush.msrb.mxu3 %v575_v43 }
  0x21   : > { %383 = vmatpush.msrb.mxu0 %v574_v42  ;;  %409 = vmatpush.msrb.mxu1 %v575_v43 }
  0x22   : > { %585 = vmatpush.msrb.mxu2 %v572_v44  ;;  %594 = vmatpush.msrb.mxu3 %v573_v45 }
  0x23   : > { %384 = vmatpush.msrb.mxu0 %v572_v44  ;;  %410 = vmatpush.msrb.mxu1 %v573_v45 }
  0x24   : > { %586 = vmatpush.msrb.mxu2 %v570_v47  ;;  %595 = vmatpush.msrb.mxu3 %v571_v48 }
  0x25   : > { %385 = vmatpush.msrb.mxu0 %v570_v47  ;;  %411 = vmatpush.msrb.mxu1 %v571_v48 }
  0x26   : > { %547 = vmatmul.msk.f32.gmra.mxu0 %vm226_vm1, %v223_v49  ;;  %550 = vmatmul.msk.f32.gmra.mxu1 %vm226_vm1, %v223_v49 }
  0x27   : > { %553 = vmatmul.msk.f32.gmra.mxu2 %vm226_vm1, %v753_v31  ;;  %556 = vmatmul.msk.f32.gmra.mxu3 %vm226_vm1, %v753_v31 }
  0x28   : > { %587 = vmatpush.msrb.mxu2 %v568_v50  ;;  %596 = vmatpush.msrb.mxu3 %v569_v51 }
  0x29   : > { %386 = vmatpush.msrb.mxu0 %v568_v50  ;;  %412 = vmatpush.msrb.mxu1 %v569_v51 }
  0x2a   : > { %588 = vmatpush.msrb.mxu2 %v566_v52  ;;  %597 = vmatpush.msrb.mxu3 %v567_v53 }
  0x2b   : > { %387 = vmatpush.msrb.mxu0 %v566_v52  ;;  %413 = vmatpush.msrb.mxu1 %v567_v53 }
  0x2c   : > { %589 = vmatpush.msrb.mxu2 %v564_v56  ;;  %598 = vmatpush.msrb.mxu3 %v565_v57 }
  0x2d   : > { %388 = vmatpush.msrb.mxu0 %v564_v56  ;;  %414 = vmatpush.msrb.mxu1 %v565_v57 }
  0x2e   : > { %548 = vmatmul.msk.f32.gmra.mxu0 %vm226_vm1, %v225_v58  ;;  %551 = vmatmul.msk.f32.gmra.mxu1 %vm226_vm1, %v225_v58 }
  0x2f   : > { %554 = vmatmul.msk.f32.gmra.mxu2 %vm226_vm1, %v777_v41  ;;  %557 = vmatmul.msk.f32.gmra.mxu3 %vm226_vm1, %v777_v41 }
  0x30   : > { %590 = vmatpush.msrb.mxu2 %v562_v59  ;;  %599 = vmatpush.msrb.mxu3 %v563_v60 }
  0x31   : > { %389 = vmatpush.msrb.mxu0 %v562_v59  ;;  %415 = vmatpush.msrb.mxu1 %v563_v60 }
  0x32   : > { %591 = vmatpush.msrb.mxu2 %v560_v61  ;;  %600 = vmatpush.msrb.mxu3 %v561_v62 }
  0x33   : > { %390 = vmatpush.msrb.mxu0 %v560_v61  ;;  %416 = vmatpush.msrb.mxu1 %v561_v62 }
  0x34   : > { %592 = vmatpush.msrb.mxu2 %v558_v2  ;;  %601 = vmatpush.msrb.mxu3 %v559_v3 }
  0x35   : > { %391 = vmatpush.msrb.mxu0 %v558_v2  ;;  %417 = vmatpush.msrb.mxu1 %v559_v3 }
  0x36   : > { %576 = vmatmul.msk.f32.vlgmr.msrb.gmra.mxu0 %vm226_vm1, %v365_v4  ;;  %579 = vmatmul.msk.f32.vlgmr.msrb.gmra.mxu1 %vm226_vm1, %v365_v4 }
  0x37   : > { %577 = vmatmul.msk.f32.vlgmr.msrb.gmra.mxu2 %vm226_vm1, %v367_v5  ;;  %580 = vmatmul.msk.f32.vlgmr.msrb.gmra.mxu3 %vm226_vm1, %v367_v5 }
  0x3f   : > { %578 = vmatmul.msk.f32.gmra.mxu2 %vm226_vm1, %v369_v7  ;;  %581 = vmatmul.msk.f32.gmra.mxu3 %vm226_vm1, %v369_v7 }
  0x9b   : > { %v250_v8 = vpop.f32.mrf.mxu0  ;;  %v276_v9 = vpop.f32.mrf.mxu1 }
  0xa2   : > { %v308_v10 = vpop.f32.mrf.mxu2  ;;  %v334_v11 = vpop.f32.mrf.mxu3 }
  0xa3   : > { %v253_v12 = vpop.f32.mrf.mxu0  ;;  %v279_v13 = vpop.f32.mrf.mxu1  ;;  %v309_v22 = vadd.f32 %v308_v10, %v250_v8  ;;  %v335_v23 = vadd.f32 %v334_v11, %v276_v9 }
  0xaa   : > { %v311_v14 = vpop.f32.mrf.mxu2  ;;  %v337_v15 = vpop.f32.mrf.mxu3 }
  0xab   : > { %v256_v16 = vpop.f32.mrf.mxu0  ;;  %v282_v17 = vpop.f32.mrf.mxu1  ;;  %v312_v26 = vadd.f32 %v311_v14, %v253_v12  ;;  %v338_v27 = vadd.f32 %v337_v15, %v279_v13 }
  0xb2   : > { %v314_v18 = vpop.f32.mrf.mxu2  ;;  %v340_v19 = vpop.f32.mrf.mxu3 }
  0xb3   : > { %v393_v20 = vpop.f32.mrf.mxu0  ;;  %v419_v21 = vpop.f32.mrf.mxu1  ;;  %v315_v37 = vadd.f32 %v314_v18, %v256_v16  ;;  %v341_v38 = vadd.f32 %v340_v19, %v282_v17 }
  0xb4   : > { %v428_v24 = vadd.f32 %v393_v20, %v309_v22  ;;  %v429_v25 = vadd.f32 %v419_v21, %v335_v23 }
  0xb6   : > { %v434_v30 = vmax.f32 %v428_v24, %v429_v25 }
  0xb8   : > { %v440_v34 = vrot.slane %v434_v30, 1 }
  0xba   : > { %v396_v28 = vpop.f32.mrf.mxu2  ;;  %v422_v29 = vpop.f32.mrf.mxu3 }
  0xbb   : > { %v430_v31 = vadd.f32 %v396_v28, %v312_v26  ;;  %v431_v32 = vadd.f32 %v422_v29, %v338_v27 }
  0xbd   : > { %v435_v33 = vmax.f32 %v430_v31, %v431_v32 }
  0xbf   : > { %v441_v35 = vrot.slane %v435_v33, 1 }
  0xc1   : > { %v442_v39 = vsel %vm218_vm0, %v440_v34, %v441_v35 }
  0xc2   : > { %v449_v40 = vmax.f32 %v434_v30, %v442_v39  ;;  %v399_v41 = vpop.f32.mrf.mxu2  ;;  %v425_v42 = vpop.f32.mrf.mxu3 }
  0xc3   : > { %v432_v43 = vadd.f32 %v399_v41, %v315_v37  ;;  %v433_v44 = vadd.f32 %v425_v42, %v341_v38 }
  0xc4   : > { %v456_v45 = vadd.f32 %v611_v36, %v449_v40 }
  0xc5   : > { %v436_v46 = vmax.f32 %v432_v43, %v433_v44 }
  0xc6   : > { %v459_v47 = vmax.f32 %v456_v45, 0.0 }
  0xc7   : > { %v443_v48 = vrot.slane %v436_v46, 1 }
  0xc8   : > { %462 = vst [vmem:[%s172_s7] sm:$0xff] %v459_v47 }
  0xc9   : > { %v444_v49 = vsel %vm218_vm0, %v441_v35, %v443_v48  ;;  %v448_v50 = vsel %vm218_vm0, %v443_v48, 0.0 }
  0xca   : > { %v450_v51 = vmax.f32 %v435_v33, %v444_v49  ;;  %v451_v52 = vmax.f32 %v436_v46, %v448_v50 }
  0xcc   : > { %v457_v53 = vadd.f32 %v611_v36, %v450_v51  ;;  %v458_v54 = vadd.f32 %v611_v36, %v451_v52 }
  0xce   : > { %v460_v55 = vmax.f32 %v457_v53, 0.0  ;;  %v461_v56 = vmax.f32 %v458_v54, 0.0 }
  0xd0   : > { %463 = vst [vmem:[%s172_s7 + $0x8] sm:$0xff] %v460_v55 }
  0xd1   : > { %464 = vst [vmem:[%s172_s7 + $0x10] sm:$0xff] %v461_v56 }
  0xd2 PF: > { %s13_s12 = sadd.s32 1, %s618_s12  }
  0xd3   : > { %p10_p4 = scmp.ge.s32.totalorder %s13_s12, 4  }
  0xd5   :  { %12 = sbr.rel (!%p10_p4) target bundleno = 1 (0x1), region = 64 }

</bundles_post_ra>
